<compile_context>
chip_gen: v7x
topology: tpu7x:2x2x1
jax: 0.10.0
libtpu: 0.0.40
codegen_flags: <defaults>
</compile_context>

<pallas_src>
import functools

import jax
import jax.numpy as jnp
from jax.experimental import pallas as pl
from jax.experimental.pallas import tpu as pltpu

_MIB = 1024 * 1024


def _tpu_vmem_capacity_bytes(default=64 * _MIB):
    """Physical VMEM per TensorCore; conservative fallback if unavailable."""
    try:
        info = pltpu.get_tpu_info()
        for attr in ("vmem_capacity_bytes", "vmem_size_bytes", "vmem_bytes"):
            v = getattr(info, attr, None)
            if v:
                return int(v)
    except Exception:
        pass
    return default


def _tpu_num_tensorcores():
    """TensorCores per chip: 2 on v7x, 1 on v5e/v6e. Conservative fallback 1."""
    try:
        kind = jax.devices()[0].device_kind.lower()
        if "v7" in kind:
            return 2
    except Exception:
        pass
    return 1


def _dice_partial_kernel(pred_ref, targ_ref, inter_ref, union_ref,
                         inter_acc, union_acc, *,
                         hw, rows, col_tile, row_block, tiles_per_split,
                         n_col_tiles, col_ragged, row_ragged, over_alloc):
    s = pl.program_id(0)      # reduction-range split (one per TC on v7x)
    rb = pl.program_id(1)     # row block
    j = pl.program_id(2)      # column tile within this split

    @pl.when(j == 0)
    def _init():
        inter_acc[...] = jnp.zeros_like(inter_acc)
        union_acc[...] = jnp.zeros_like(union_acc)

    tile_idx = s * tiles_per_split + j

    def _accumulate(mask_cols):
        p = pred_ref[...].astype(jnp.float32)
        t = targ_ref[...].astype(jnp.float32)
        valid = None
        if mask_cols:
            lane = jax.lax.broadcasted_iota(jnp.int32, p.shape, 1)
            valid = (tile_idx * col_tile + lane) < hw
        if row_ragged:
            sub = jax.lax.broadcasted_iota(jnp.int32, p.shape, 0)
            vrow = (rb * row_block + sub) < rows
            valid = vrow if valid is None else jnp.logical_and(valid, vrow)
        if valid is not None:
            # Mask-before-use: garbage lanes/rows never reach the arithmetic.
            p = jnp.where(valid, p, 0.0)
            t = jnp.where(valid, t, 0.0)
        inter_acc[...] += jnp.sum(p * t, axis=1, keepdims=True)
        union_acc[...] += jnp.sum(p + t, axis=1, keepdims=True)

    if col_ragged:
        is_ragged = tile_idx == (n_col_tiles - 1)
        full_tile = jnp.logical_not(is_ragged)
        if over_alloc:
            full_tile = jnp.logical_and(full_tile, tile_idx < n_col_tiles)

        @pl.when(full_tile)
        def _full():
            _accumulate(mask_cols=False)

        @pl.when(is_ragged)
        def _rag():
            _accumulate(mask_cols=True)
    elif over_alloc:
        @pl.when(tile_idx < n_col_tiles)
        def _full():
            _accumulate(mask_cols=False)
    else:
        _accumulate(mask_cols=False)

    @pl.when(j == tiles_per_split - 1)
    def _finalize():
        inter_ref[0] = inter_acc[...]
        union_ref[0] = union_acc[...]


def dice_loss(pred, target, smooth=1e-5):
    assert pred.shape == target.shape and pred.ndim == 4
    n, c, h, w = pred.shape
    nc, hw = n * c, h * w

    # Fill vreg sublanes when N*C is tiny: fold a factor of H*W into rows
    # (pure reshape, no extra HBM traffic); un-fold in the final glue.
    fold = 1
    if nc < 8:
        for cand in (8, 4, 2):
            if nc * cand <= 8 and hw % cand == 0:
                fold = cand
                break
    rows = nc * fold
    hw_eff = hw // fold

    p2 = pred.reshape(rows, hw_eff)
    t2 = target.reshape(rows, hw_eff)

    itemsize = jnp.dtype(pred.dtype).itemsize

    # Generation-aware VMEM budget: scoped limit ~= half of physical VMEM,
    # and 2 inputs x 2 pipeline buffers x tile <= half of that limit.
    #   v5e/v6e (128 MiB): limit 64 MiB -> <= 8 MiB per input tile.
    #   v7x     ( 64 MiB): limit 32 MiB -> <= 4 MiB per input tile.
    vmem_cap = _tpu_vmem_capacity_bytes()
    vmem_limit = max(16 * _MIB, min(vmem_cap // 2, 64 * _MIB))
    max_tile_bytes = max(_MIB, vmem_limit // 8)

    # Row tiling bounds tile / accumulator size for very large N*C.
    max_row_block = 1024
    row_block = rows if rows <= max_row_block else max_row_block
    n_row_blocks = pl.cdiv(rows, row_block)
    row_ragged = n_row_blocks * row_block != rows

    max_cols = max(128, (max_tile_bytes // max(1, row_block * itemsize)) // 128 * 128)

    # Split the reduction range across both TensorCores only on multi-TC
    # chips (v7x); on single-TC chips a split only adds overhead.
    n_cores = _tpu_num_tensorcores()
    want_split = n_cores >= 2 and hw_eff >= 256

    if hw_eff <= max_cols and not want_split:
        col_tile = hw_eff                           # full reduction axis, one tile
    elif want_split:
        per_core = pl.cdiv(pl.cdiv(hw_eff, n_cores), 128) * 128
        col_tile = min(max_cols, max(128, per_core))
    else:
        col_tile = max_cols                         # large multiple of 128
    n_col_tiles = pl.cdiv(hw_eff, col_tile)

    n_split = n_cores if (want_split and n_col_tiles >= n_cores) else 1
    tiles_per_split = pl.cdiv(n_col_tiles, n_split)
    over_alloc = n_split * tiles_per_split > n_col_tiles
    col_ragged = n_col_tiles * col_tile != hw_eff

    padded_rows = n_row_blocks * row_block

    def in_map(s, rb, j):
        # Over-allocated tiles of the last split are clamped here and skipped
        # inside the kernel, so the duplicated DMA contributes nothing.
        return (rb, jnp.minimum(s * tiles_per_split + j, n_col_tiles - 1))

    kernel = functools.partial(
        _dice_partial_kernel,
        hw=hw_eff, rows=rows, col_tile=col_tile, row_block=row_block,
        tiles_per_split=tiles_per_split, n_col_tiles=n_col_tiles,
        col_ragged=col_ragged, row_ragged=row_ragged, over_alloc=over_alloc)

    cost = pl.CostEstimate(
        flops=4 * rows * hw_eff,
        transcendentals=0,
        bytes_accessed=2 * rows * hw_eff * itemsize + 2 * n_split * padded_rows * 4)

    if n_split > 1:
        dim_sems = (pltpu.CORE_PARALLEL, pltpu.PARALLEL, pltpu.ARBITRARY)
    else:
        dim_sems = ("parallel", "parallel", "arbitrary")

    inter_parts, union_parts = pl.pallas_call(
        kernel,
        out_shape=(jax.ShapeDtypeStruct((n_split, padded_rows, 1), jnp.float32),
                   jax.ShapeDtypeStruct((n_split, padded_rows, 1), jnp.float32)),
        grid_spec=pltpu.PrefetchScalarGridSpec(
            num_scalar_prefetch=0,
            grid=(n_split, n_row_blocks, tiles_per_split),
            in_specs=[
                pl.BlockSpec((row_block, col_tile), in_map),
                pl.BlockSpec((row_block, col_tile), in_map),
            ],
            out_specs=[
                pl.BlockSpec((1, row_block, 1), lambda s, rb, j: (s, rb, 0)),
                pl.BlockSpec((1, row_block, 1), lambda s, rb, j: (s, rb, 0)),
            ],
            scratch_shapes=[
                pltpu.VMEM((row_block, 1), jnp.float32),
                pltpu.VMEM((row_block, 1), jnp.float32),
            ],
        ),
        compiler_params=pltpu.CompilerParams(
            dimension_semantics=dim_sems,
            vmem_limit_bytes=vmem_limit),
        cost_estimate=cost,
    )(p2, t2)

    # Final scalar glue: combine splits / folded rows, dice, mean.
    inter = jnp.sum(inter_parts[:, :rows, 0], axis=0)   # (rows,)
    union = jnp.sum(union_parts[:, :rows, 0], axis=0)   # (rows,)
    if fold > 1:
        inter = inter.reshape(nc, fold).sum(axis=1)
        union = union.reshape(nc, fold).sum(axis=1)
    dice = (2.0 * inter + smooth) / (union + smooth)
    return (1.0 - jnp.mean(dice)).astype(jnp.float32)


def dice_loss_ref(pred, target, smooth=1e-5):
    pred = pred.astype(jnp.float32)
    target = target.astype(jnp.float32)
    intersection = jnp.sum(pred * target, axis=(2, 3))
    union = jnp.sum(pred, axis=(2, 3)) + jnp.sum(target, axis=(2, 3))
    dice = (2.0 * intersection + smooth) / (union + smooth)
    return 1.0 - jnp.mean(dice)


if __name__ == "__main__":
    key = jax.random.PRNGKey(0)
    k1, k2 = jax.random.split(key)
    # Small shapes consistent with binary-segmentation NCHW inputs.
    pred = jax.nn.sigmoid(jax.random.normal(k1, (2, 4, 16, 16), jnp.float32))
    target = (jax.random.uniform(k2, (2, 4, 16, 16)) > 0.5).astype(jnp.float32)

    out = jax.block_until_ready(dice_loss(pred, target))
    ref = jax.block_until_ready(dice_loss_ref(pred, target))
    assert jnp.allclose(out, ref, atol=1e-5, rtol=1e-5), (out, ref)
    print("KERNEL_OK")
</pallas_src>

<mosaic_0001>
module attributes {stable_mosaic.version = 11 : i64} {
  func.func @_dice_partial_kernel(%arg0: i32, %arg1: i32, %arg2: i32, %arg3: memref<8x256xf32, #tpu.memory_space<vmem>>, %arg4: memref<8x256xf32, #tpu.memory_space<vmem>>, %arg5: memref<1x8x1xf32, #tpu.memory_space<vmem>>, %arg6: memref<1x8x1xf32, #tpu.memory_space<vmem>>, %arg7: memref<8x1xf32, #tpu.memory_space<vmem>>, %arg8: memref<8x1xf32, #tpu.memory_space<vmem>>) attributes {dimension_semantics = [#tpu.dimension_semantics<parallel>, #tpu.dimension_semantics<parallel>, #tpu.dimension_semantics<arbitrary>], iteration_bounds = array<i64: 1, 1, 1>, scalar_prefetch = 0 : i64, scratch_operands = 2 : i64, tpu.core_type = #tpu.core_type<tc>, window_params = [{transform_indices = @transform_0, window_bounds = array<i64: 8, 256>}, {transform_indices = @transform_1, window_bounds = array<i64: 8, 256>}, {transform_indices = @transform_2, window_bounds = array<i64: 1, 8, 1>}, {transform_indices = @transform_3, window_bounds = array<i64: 1, 8, 1>}]} {
    %c0_i32 = arith.constant 0 : i32
    %0 = arith.cmpi eq, %arg2, %c0_i32 : i32
    %1 = arith.extui %0 : i1 to i32
    %c0_i32_0 = arith.constant 0 : i32
    %2 = arith.cmpi ne, %1, %c0_i32_0 : i32
    scf.if %2 {
      %cst_15 = arith.constant 0.000000e+00 : f32
      %20 = vector.broadcast %cst_15 : f32 to vector<8x1xf32>
      %c0_16 = arith.constant 0 : index
      %c0_17 = arith.constant 0 : index
      %21 = vector.load %arg7[%c0_16, %c0_17] : memref<8x1xf32, #tpu.memory_space<vmem>>, vector<8x1xf32>
      tpu.vector_store %arg7[%c0_16, %c0_17], %20 {strides = array<i32>} : memref<8x1xf32, #tpu.memory_space<vmem>>, vector<8x1xf32>,
      %cst_18 = arith.constant 0.000000e+00 : f32
      %22 = vector.broadcast %cst_18 : f32 to vector<8x1xf32>
      %c0_19 = arith.constant 0 : index
      %c0_20 = arith.constant 0 : index
      %23 = vector.load %arg8[%c0_19, %c0_20] : memref<8x1xf32, #tpu.memory_space<vmem>>, vector<8x1xf32>
      tpu.vector_store %arg8[%c0_19, %c0_20], %22 {strides = array<i32>} : memref<8x1xf32, #tpu.memory_space<vmem>>, vector<8x1xf32>,
    } else {
    }
    %c0 = arith.constant 0 : index
    %c0_1 = arith.constant 0 : index
    %3 = vector.load %arg3[%c0, %c0_1] : memref<8x256xf32, #tpu.memory_space<vmem>>, vector<8x256xf32>
    %c0_2 = arith.constant 0 : index
    %c0_3 = arith.constant 0 : index
    %4 = vector.load %arg4[%c0_2, %c0_3] : memref<8x256xf32, #tpu.memory_space<vmem>>, vector<8x256xf32>
    %c0_4 = arith.constant 0 : index
    %c0_5 = arith.constant 0 : index
    %5 = vector.load %arg7[%c0_4, %c0_5] : memref<8x1xf32, #tpu.memory_space<vmem>>, vector<8x1xf32>
    %6 = arith.mulf %3, %4 : vector<8x256xf32>
    %cst = arith.constant dense<0.000000e+00> : vector<8xf32>
    %7 = vector.multi_reduction <add>, %6, %cst [1] : vector<8x256xf32> to vector<8xf32>
    %8 = vector.shape_cast %7 : vector<8xf32> to vector<8x1xf32>
    %9 = arith.addf %5, %8 : vector<8x1xf32>
    %c0_6 = arith.constant 0 : index
    %c0_7 = arith.constant 0 : index
    %10 = vector.load %arg7[%c0_6, %c0_7] : memref<8x1xf32, #tpu.memory_space<vmem>>, vector<8x1xf32>
    tpu.vector_store %arg7[%c0_6, %c0_7], %9 {strides = array<i32>} : memref<8x1xf32, #tpu.memory_space<vmem>>, vector<8x1xf32>,
    %c0_8 = arith.constant 0 : index
    %c0_9 = arith.constant 0 : index
    %11 = vector.load %arg8[%c0_8, %c0_9] : memref<8x1xf32, #tpu.memory_space<vmem>>, vector<8x1xf32>
    %12 = arith.addf %3, %4 : vector<8x256xf32>
    %cst_10 = arith.constant dense<0.000000e+00> : vector<8xf32>
    %13 = vector.multi_reduction <add>, %12, %cst_10 [1] : vector<8x256xf32> to vector<8xf32>
    %14 = vector.shape_cast %13 : vector<8xf32> to vector<8x1xf32>
    %15 = arith.addf %11, %14 : vector<8x1xf32>
    %c0_11 = arith.constant 0 : index
    %c0_12 = arith.constant 0 : index
    %16 = vector.load %arg8[%c0_11, %c0_12] : memref<8x1xf32, #tpu.memory_space<vmem>>, vector<8x1xf32>
    tpu.vector_store %arg8[%c0_11, %c0_12], %15 {strides = array<i32>} : memref<8x1xf32, #tpu.memory_space<vmem>>, vector<8x1xf32>,
    %c0_i32_13 = arith.constant 0 : i32
    %17 = arith.cmpi eq, %arg2, %c0_i32_13 : i32
    %18 = arith.extui %17 : i1 to i32
    %c0_i32_14 = arith.constant 0 : i32
    %19 = arith.cmpi ne, %18, %c0_i32_14 : i32
    scf.if %19 {
      %c0_15 = arith.constant 0 : index
      %c0_16 = arith.constant 0 : index
      %20 = vector.load %arg7[%c0_15, %c0_16] : memref<8x1xf32, #tpu.memory_space<vmem>>, vector<8x1xf32>
      %c0_17 = arith.constant 0 : index
      %c0_18 = arith.constant 0 : index
      %c0_19 = arith.constant 0 : index
      %21 = vector.load %arg5[%c0_17, %c0_18, %c0_19] : memref<1x8x1xf32, #tpu.memory_space<vmem>>, vector<1x8x1xf32>
      %22 = vector.shape_cast %21 : vector<1x8x1xf32> to vector<8x1xf32>
      %23 = vector.shape_cast %20 : vector<8x1xf32> to vector<1x8x1xf32>
      tpu.vector_store %arg5[%c0_17, %c0_18, %c0_19], %23 {strides = array<i32>} : memref<1x8x1xf32, #tpu.memory_space<vmem>>, vector<1x8x1xf32>,
      %c0_20 = arith.constant 0 : index
      %c0_21 = arith.constant 0 : index
      %24 = vector.load %arg8[%c0_20, %c0_21] : memref<8x1xf32, #tpu.memory_space<vmem>>, vector<8x1xf32>
      %c0_22 = arith.constant 0 : index
      %c0_23 = arith.constant 0 : index
      %c0_24 = arith.constant 0 : index
      %25 = vector.load %arg6[%c0_22, %c0_23, %c0_24] : memref<1x8x1xf32, #tpu.memory_space<vmem>>, vector<1x8x1xf32>
      %26 = vector.shape_cast %25 : vector<1x8x1xf32> to vector<8x1xf32>
      %27 = vector.shape_cast %24 : vector<8x1xf32> to vector<1x8x1xf32>
      tpu.vector_store %arg6[%c0_22, %c0_23, %c0_24], %27 {strides = array<i32>} : memref<1x8x1xf32, #tpu.memory_space<vmem>>, vector<1x8x1xf32>,
    } else {
    }
    return
  }
  func.func @transform_0(%arg0: i32, %arg1: i32, %arg2: i32) -> (i32, i32) {
    %c1_i32 = arith.constant 1 : i32
    %0 = arith.muli %arg0, %c1_i32 : i32
    %1 = arith.addi %0, %arg2 : i32
    %c0_i32 = arith.constant 0 : i32
    %2 = arith.minsi %1, %c0_i32 : i32
    %c0_i32_0 = arith.constant 0 : i32
    return %arg1, %2 : i32, i32
  }
  func.func @transform_1(%arg0: i32, %arg1: i32, %arg2: i32) -> (i32, i32) {
    %c1_i32 = arith.constant 1 : i32
    %0 = arith.muli %arg0, %c1_i32 : i32
    %1 = arith.addi %0, %arg2 : i32
    %c0_i32 = arith.constant 0 : i32
    %2 = arith.minsi %1, %c0_i32 : i32
    %c0_i32_0 = arith.constant 0 : i32
    return %arg1, %2 : i32, i32
  }
  func.func @transform_2(%arg0: i32, %arg1: i32, %arg2: i32) -> (i32, i32, i32) {
    %c0_i32 = arith.constant 0 : i32
    %c0_i32_0 = arith.constant 0 : i32
    return %arg0, %arg1, %c0_i32 : i32, i32, i32
  }
  func.func @transform_3(%arg0: i32, %arg1: i32, %arg2: i32) -> (i32, i32, i32) {
    %c0_i32 = arith.constant 0 : i32
    %c0_i32_0 = arith.constant 0 : i32
    return %arg0, %arg1, %c0_i32 : i32, i32, i32
  }
}

</mosaic_0001>

<bundles_post_ra>
// kernel: tpu_custom_call.1
= control target key start
LH: loop header
LB: loop body
LE: loop exit
PB: predicated region body
PF: predicated region fallthrough
CT: control target
= control target key end

     0   :  { %9 = vsyncpa [#allocation5], 0  ;;  %s216_s0 = inlined_call_operand.hbm [shape: f32[8,256], index: 0, kind: input, shape index: {}]   ;;  %s217_s1 = inlined_call_operand.hbm [shape: f32[8,256], index: 1, kind: input, shape index: {}]   ;;  %s218_s2 = inlined_call_operand.vmem [shape: f32[1,8,1], index: 2, kind: output, shape index: {0}]   ;;  %s219_s3 = inlined_call_operand.vmem [shape: f32[1,8,1], index: 3, kind: output, shape index: {1}]  }
   0x1   :  { %10 = vsyncpa [#allocation7], 0  ;;  %s157_s12 = smov [#allocation4]   ;;  %s158_s14 = smov [#allocation6]  }
   0x2   :  { %s23_s13 = sshll.u32 %s157_s12, 4  ;;  %s39_s15 = sshll.u32 %s158_s14, 4  ;;  %s24_s13 = int_to_ptr.vmem [resolvable:$true] %s23_s13  ;;  %s40_s15 = int_to_ptr.vmem [resolvable:$true] %s39_s15 }
   0x3   :  { %s109_s18 = scalar_lea.hbm %s216_s0, 256 }
   0x4   :  { %p110_p0 = scmp.ne.s32.totalorder %s216_s0, %s109_s18  ;;  %p113_p1 = scmp.lt.u32.totalorder %s109_s18, %s216_s0 }
   0x6   :  { %p115_p2 = pnand %p113_p1, %p110_p0 }
   0x8   :  { %118 = shalt.err (!%p115_p2)
}
   0x9   :  { %s119_s23 = scalar_lea.vmem %s24_s13, 256  ;;  %p124_p4 = scmp.lt.s32.totalorder %s24_s13, %s24_s13 }
   0xa   :  { %p120_p3 = scmp.ne.s32.totalorder %s24_s13, %s119_s23  ;;  %p125_p5 = scmp.lt.s32.totalorder %s119_s23, %s119_s23 }
   0xc   :  { %p126_p6 = por %p125_p5, %p124_p4 }
   0xe   :  { %p127_p7 = pnand %p126_p6, %p120_p3 }
  0x10   :  { %130 = shalt.err (!%p127_p7)
}
  0x11   :  { %26 = dma.hbm_to_vmem [thread:$0]  %s216_s0, 256, %s24_s13, [#allocation5]  }
  0x12   :  { %s131_s28 = scalar_lea.hbm %s217_s1, 256 }
  0x13   :  { %p132_p8 = scmp.ne.s32.totalorder %s217_s1, %s131_s28  ;;  %p135_p9 = scmp.lt.u32.totalorder %s131_s28, %s217_s1 }
  0x15   :  { %p137_p10 = pnand %p135_p9, %p132_p8 }
  0x17   :  { %140 = shalt.err (!%p137_p10)
}
  0x18   :  { %s141_s6 = scalar_lea.vmem %s40_s15, 256  ;;  %p146_p12 = scmp.lt.s32.totalorder %s40_s15, %s40_s15 }
  0x19   :  { %p142_p11 = scmp.ne.s32.totalorder %s40_s15, %s141_s6  ;;  %p147_p13 = scmp.lt.s32.totalorder %s141_s6, %s141_s6 }
  0x1b   :  { %p148_p0 = por %p147_p13, %p146_p12 }
  0x1d   :  { %p149_p1 = pnand %p148_p0, %p142_p11 }
  0x1f   :  { %152 = shalt.err (!%p149_p1)
}
  0x20   :  { %42 = dma.hbm_to_vmem [thread:$0]  %s217_s1, 256, %s40_s15, [#allocation7]  }
  0x21   :  { %153 = dma.done.wait [#allocation5], 256  }
  0x22   :  { %154 = vsyncadd [#allocation5], 4294967040 }
  0x23   :  { %155 = dma.done.wait [#allocation7], 256  }
  0x24   :  { %156 = vsyncadd [#allocation7], 4294967040  ;;  %vm61_vm0 = vcmask 7168   ;;  %v159_v0 = vmov 0.0   ;;  %v64_v1 = vld [vmem:[#allocation4] sm:$0xff]  ;;  %v65_v2 = vld [vmem:[#allocation4 + $0x8] sm:$0xff] }
  0x25   :  { %62 = vst.msk [vmem:[#allocation2] sm:$0xff] %vm61_vm0, %v159_v0  ;;  %63 = vst.msk [vmem:[#allocation3] sm:$0xff] %vm61_vm0, %v159_v0  ;;  %v66_v3 = vld [vmem:[#allocation6] sm:$0xff]  ;;  %v67_v4 = vld [vmem:[#allocation6 + $0x8] sm:$0xff] }
  0x26   :  { %v69_v5 = vmul.f32 %v66_v3, %v64_v1  ;;  %v70_v6 = vmul.f32 %v67_v4, %v65_v2  ;;  %v78_v7 = vadd.f32 %v66_v3, %v64_v1  ;;  %v79_v8 = vadd.f32 %v67_v4, %v65_v2 }
  0x28   :  { %v71_v9 = vadd.f32 %v70_v6, %v69_v5  ;;  %v80_v10 = vadd.f32 %v79_v8, %v78_v7 }
  0x2a   :  { %72 = vadd.xlane.f32.xlu0 %v71_v9 }
  0x2c   :  { %v68_v11 = vld [vmem:[#allocation2] sm:$0xff]  ;;  %v77_v14 = vld [vmem:[#allocation3] sm:$0xff] }
  0x2e   :  { %81 = vadd.xlane.f32.xlu0 %v80_v10 }
  0xb7   :  { %v73_v12 = vpop.xlane.xlu0 %72 }
  0xb8   :  { %v74_v13 = vadd.f32 %v73_v12, %v68_v11 }
  0xba   :  { %76 = vst.msk [vmem:[#allocation2] sm:$0xff] %vm61_vm0, %v74_v13 }
  0xbb   :  { %v82_v15 = vpop.xlane.xlu0 %81 }
  0xbc   :  { %v83_v16 = vadd.f32 %v82_v15, %v77_v14 }
  0xbe   :  { %84 = vst.msk [vmem:[#allocation3] sm:$0xff] %vm61_vm0, %v83_v16 }
  0xc1   :  { %v88_v17 = vld [vmem:[#allocation2] sm:$0xff] }
  0xc2   :  { %89 = vst.msk [vmem:[%s218_s2] sm:$0xff] %vm61_vm0, %v88_v17 }
  0xc5   :  { %v90_v18 = vld [vmem:[#allocation3] sm:$0xff] }
  0xc6   :  { %91 = vst.msk [vmem:[%s219_s3] sm:$0xff] %vm61_vm0, %v90_v18 }
  0xc7   :  { %100 = vsyncpa [#allocation5], 1 }
  0xc8   :  { %101 = vsyncpa [#allocation7], 1 }

</bundles_post_ra>
